<compile_context>
chip_gen: v6e
topology: v6e:2x2x1
jax: 0.10.0
libtpu: 0.0.40
codegen_flags: <defaults>
</compile_context>

<pallas_src>
import functools
import math

import jax
import jax.numpy as jnp
from jax import lax
from jax.experimental import pallas as pl
from jax.experimental.pallas import tpu as pltpu

_MASK_VALUE = -1e30            # finite mask: avoids -inf - (-inf) = NaN
_VMEM_LIMIT = 32 * 1024 * 1024  # explicit scoped-VMEM budget (fits v5e/v6e/v7x)


def _round_up(x, m):
    return (x + m - 1) // m * m


# ---------------------------------------------------------------------------
# Stage 1: fused Q/K/V projection (x read once; q pre-scaled; bf16 outputs).
# ---------------------------------------------------------------------------
def _qkv_proj_kernel(x_ref, wq_ref, wk_ref, wv_ref, q_ref, k_ref, v_ref, *, scale):
    bb, tp, d_model = x_ref.shape
    hp = wq_ref.shape[1]
    # (bb, tp, D) -> (bb*tp, D); tp % 8 == 0 so the collapse is tile-aligned.
    x = x_ref[...].astype(jnp.bfloat16).reshape(bb * tp, d_model)
    q = jnp.dot(x, wq_ref[...], preferred_element_type=jnp.float32) * scale
    k = jnp.dot(x, wk_ref[...], preferred_element_type=jnp.float32)
    v = jnp.dot(x, wv_ref[...], preferred_element_type=jnp.float32)
    q_ref[...] = q.reshape(bb, tp, hp).astype(q_ref.dtype)
    k_ref[...] = k.reshape(bb, tp, hp).astype(k_ref.dtype)
    v_ref[...] = v.reshape(bb, tp, hp).astype(v_ref.dtype)


# ---------------------------------------------------------------------------
# Stage 2: flash-style causal attention over precomputed q/k/v tiles.
# ---------------------------------------------------------------------------
def _flash_attn_kernel(q_ref, k_ref, v_ref, o_ref, m_sc, l_sc, acc_sc, *, tq, tk):
    qi = pl.program_id(1)
    ki = pl.program_id(2)
    nk = pl.num_programs(2)

    @pl.when(ki == 0)
    def _init():
        m_sc[...] = jnp.full(m_sc.shape, _MASK_VALUE, m_sc.dtype)
        l_sc[...] = jnp.zeros(l_sc.shape, l_sc.dtype)
        acc_sc[...] = jnp.zeros(acc_sc.shape, acc_sc.dtype)

    def _update(masked):
        # bf16 operands, f32 MXU accumulation; softmax math stays f32.
        s = jnp.einsum('bqh,bkh->bqk', q_ref[...], k_ref[...],
                       preferred_element_type=jnp.float32)
        if masked:
            # tq == tk, so on the diagonal tile the global offsets cancel and
            # an in-tile causal mask is exact.
            row = lax.broadcasted_iota(jnp.int32, (tq, tk), 0)
            col = lax.broadcasted_iota(jnp.int32, (tq, tk), 1)
            s = jnp.where((col <= row)[None, :, :], s, _MASK_VALUE)
        m_prev = m_sc[...]
        m_new = jnp.maximum(m_prev, jnp.max(s, axis=-1, keepdims=True))
        alpha = jnp.exp(m_prev - m_new)
        p = jnp.exp(s - m_new)
        l_sc[...] = alpha * l_sc[...] + jnp.sum(p, axis=-1, keepdims=True)
        acc_sc[...] = alpha * acc_sc[...] + jnp.einsum(
            'bqk,bkh->bqh', p.astype(v_ref.dtype), v_ref[...],
            preferred_element_type=jnp.float32)
        m_sc[...] = m_new

    @pl.when(ki == qi)        # diagonal tile: needs the causal mask
    def _diag():
        _update(True)

    @pl.when(ki < qi)         # strictly below the diagonal: mask-free path
    def _below():
        _update(False)

    # ki > qi tiles are causally dead; their kv index_map is clamped in the
    # wrapper so they also issue no DMA.

    @pl.when(ki == nk - 1)
    def _finalize():
        inv_l = pl.reciprocal(l_sc[...], approx=True)
        o_ref[...] = (acc_sc[...] * inv_l).astype(o_ref.dtype)


def attention_head(x, wq, wk, wv, *, block=128):
    """x: (B, T, d_model) f32; wq/wk/wv: (d_model, d_head) -> (B, T, d_head) f32.

    Weights are laid out (d_model, d_head), i.e. the transpose of
    nn.Linear.weight. block=128 is safe on all generations; sweep 256 on v6e.
    """
    B, T, D = x.shape
    H = wq.shape[1]
    scale = float(H) ** -0.5        # module scales by the true d_head

    # Lane-dense head dim (zero columns contribute exactly zero everywhere).
    # TODO(synk): for d_head << 128, pack several heads per call to recover MXU
    # utilization; a single AttentionHead forward only has one head.
    Hp = _round_up(H, 128)

    # Sequence tiles (sublane-aligned); padded key rows never reach real query
    # rows thanks to causality, padded query rows are sliced off at the end.
    t = min(block, _round_up(T, 8))
    T_pad = _round_up(T, t)
    nq = T_pad // t
    tq = tk = t

    # Fold batch elements into one grid step at tiny T to amortize per-step
    # overhead, but keep >= 2 parallel grid points so both v7x cores get work.
    if nq == 1:
        bb = min(B, max(1, 256 // T_pad))
        while B % bb:
            bb -= 1
        while bb > 1 and (B // bb) * nq < 2:
            bb -= 1
            while B % bb:
                bb -= 1
    else:
        bb = 1

    x_p = x if T_pad == T else jnp.pad(x, ((0, 0), (0, T_pad - T), (0, 0)))
    pad_h = Hp - H
    wq_p = jnp.pad(wq, ((0, 0), (0, pad_h))).astype(jnp.bfloat16)
    wk_p = jnp.pad(wk, ((0, 0), (0, pad_h))).astype(jnp.bfloat16)
    wv_p = jnp.pad(wv, ((0, 0), (0, pad_h))).astype(jnp.bfloat16)

    # ---- stage 1: projection ----
    q, k, v = pl.pallas_call(
        functools.partial(_qkv_proj_kernel, scale=scale),
        out_shape=tuple(jax.ShapeDtypeStruct((B, T_pad, Hp), jnp.bfloat16)
                        for _ in range(3)),
        grid_spec=pltpu.PrefetchScalarGridSpec(
            num_scalar_prefetch=0,
            grid=(B // bb, nq),
            in_specs=[
                pl.BlockSpec((bb, tq, D), lambda b, ti: (b, ti, 0)),   # x
                pl.BlockSpec((D, Hp), lambda b, ti: (0, 0)),           # Wq
                pl.BlockSpec((D, Hp), lambda b, ti: (0, 0)),           # Wk
                pl.BlockSpec((D, Hp), lambda b, ti: (0, 0)),           # Wv
            ],
            out_specs=[
                pl.BlockSpec((bb, tq, Hp), lambda b, ti: (b, ti, 0)),
                pl.BlockSpec((bb, tq, Hp), lambda b, ti: (b, ti, 0)),
                pl.BlockSpec((bb, tq, Hp), lambda b, ti: (b, ti, 0)),
            ],
        ),
        compiler_params=pltpu.CompilerParams(
            dimension_semantics=("parallel", "parallel"),
            vmem_limit_bytes=_VMEM_LIMIT,
        ),
    )(x_p, wq_p, wk_p, wv_p)

    # ---- stage 2: flash attention ----
    kernel = functools.partial(_flash_attn_kernel, tq=tq, tk=tk)
    out = pl.pallas_call(
        kernel,
        out_shape=jax.ShapeDtypeStruct((B, T_pad, Hp), jnp.float32),
        grid_spec=pltpu.PrefetchScalarGridSpec(
            num_scalar_prefetch=0,
            grid=(B // bb, nq, nq),
            in_specs=[
                pl.BlockSpec((bb, tq, Hp), lambda b, qi, ki: (b, qi, 0)),
                # Clamp kv block index: causally-skipped upper-triangle steps
                # revisit the already-resident tile -> no DMA issued.
                pl.BlockSpec((bb, tk, Hp),
                             lambda b, qi, ki: (b, jnp.minimum(ki, qi), 0)),
                pl.BlockSpec((bb, tk, Hp),
                             lambda b, qi, ki: (b, jnp.minimum(ki, qi), 0)),
            ],
            out_specs=pl.BlockSpec((bb, tq, Hp), lambda b, qi, ki: (b, qi, 0)),
            scratch_shapes=[
                pltpu.VMEM((bb, tq, 1), jnp.float32),    # running max m
                pltpu.VMEM((bb, tq, 1), jnp.float32),    # running sum l
                pltpu.VMEM((bb, tq, Hp), jnp.float32),   # output accumulator
            ],
        ),
        compiler_params=pltpu.CompilerParams(
            dimension_semantics=("parallel", "parallel", "arbitrary"),
            vmem_limit_bytes=_VMEM_LIMIT,
        ),
    )(q, k, v)

    return out[:, :T, :H]


def _reference(x, wq, wk, wv):
    # Pure-JAX f32 reference mirroring the PyTorch forward.
    H = wq.shape[1]
    q = x @ wq
    k = x @ wk
    v = x @ wv
    scores = (q @ jnp.swapaxes(k, -2, -1)) * (H ** -0.5)
    T = x.shape[1]
    mask = jnp.tril(jnp.ones((T, T), dtype=bool))
    scores = jnp.where(mask, scores, -jnp.inf)
    w = jax.nn.softmax(scores, axis=-1)
    return w @ v


if __name__ == "__main__":
    def make_inputs(key, B, T, D, H):
        kx, kq, kk, kv = jax.random.split(key, 4)
        bound = 1.0 / math.sqrt(D)
        x = jax.random.normal(kx, (B, T, D), dtype=jnp.float32)
        wq = jax.random.uniform(kq, (D, H), jnp.float32, -bound, bound)
        wk = jax.random.uniform(kk, (D, H), jnp.float32, -bound, bound)
        wv = jax.random.uniform(kv, (D, H), jnp.float32, -bound, bound)
        return x, wq, wk, wv

    # Small shapes consistent with the module: batch=2, seq=8, d_model=32, d_head=16.
    x, wq, wk, wv = make_inputs(jax.random.PRNGKey(0), 2, 8, 32, 16)
    out = jax.block_until_ready(attention_head(x, wq, wk, wv))
    ref = _reference(x, wq, wk, wv)
    assert out.shape == ref.shape
    # Tolerance covers bf16 MXU operands (f32 accumulation) + approx reciprocal.
    assert jnp.allclose(out, ref, atol=2e-2, rtol=2e-2), "mismatch vs reference (small)"

    # Exercise the multi-tile flash path (sequence padding, diagonal-only mask,
    # clamped kv index_map).
    x2, wq2, wk2, wv2 = make_inputs(jax.random.PRNGKey(1), 2, 200, 32, 16)
    out2 = jax.block_until_ready(attention_head(x2, wq2, wk2, wv2))
    ref2 = _reference(x2, wq2, wk2, wv2)
    assert jnp.allclose(out2, ref2, atol=2e-2, rtol=2e-2), "mismatch vs reference (tiled)"

    print("KERNEL_OK")
</pallas_src>

<mosaic_0001>
module attributes {stable_mosaic.version = 11 : i64} {
  func.func @_qkv_proj_kernel(%arg0: i32, %arg1: i32, %arg2: memref<1x8x32xf32, #tpu.memory_space<vmem>>, %arg3: memref<32x128xbf16, #tpu.memory_space<vmem>>, %arg4: memref<32x128xbf16, #tpu.memory_space<vmem>>, %arg5: memref<32x128xbf16, #tpu.memory_space<vmem>>, %arg6: memref<1x8x128xbf16, #tpu.memory_space<vmem>>, %arg7: memref<1x8x128xbf16, #tpu.memory_space<vmem>>, %arg8: memref<1x8x128xbf16, #tpu.memory_space<vmem>>) attributes {dimension_semantics = [#tpu.dimension_semantics<parallel>, #tpu.dimension_semantics<parallel>], iteration_bounds = array<i64: 2, 1>, scalar_prefetch = 0 : i64, scratch_operands = 0 : i64, tpu.core_type = #tpu.core_type<tc>, window_params = [{transform_indices = @transform_0, window_bounds = array<i64: 1, 8, 32>}, {pipeline_mode = #tpu.pipeline_mode<synchronous>, transform_indices = @transform_1, window_bounds = array<i64: 32, 128>}, {pipeline_mode = #tpu.pipeline_mode<synchronous>, transform_indices = @transform_2, window_bounds = array<i64: 32, 128>}, {pipeline_mode = #tpu.pipeline_mode<synchronous>, transform_indices = @transform_3, window_bounds = array<i64: 32, 128>}, {transform_indices = @transform_4, window_bounds = array<i64: 1, 8, 128>}, {transform_indices = @transform_5, window_bounds = array<i64: 1, 8, 128>}, {transform_indices = @transform_6, window_bounds = array<i64: 1, 8, 128>}]} {
    %c0 = arith.constant 0 : index
    %c0_0 = arith.constant 0 : index
    %c0_1 = arith.constant 0 : index
    %0 = vector.load %arg2[%c0, %c0_0, %c0_1] : memref<1x8x32xf32, #tpu.memory_space<vmem>>, vector<1x8x32xf32>
    %1 = arith.truncf %0 : vector<1x8x32xf32> to vector<1x8x32xbf16>
    %2 = vector.shape_cast %1 : vector<1x8x32xbf16> to vector<8x32xbf16>
    %c0_2 = arith.constant 0 : index
    %c0_3 = arith.constant 0 : index
    %3 = vector.load %arg3[%c0_2, %c0_3] : memref<32x128xbf16, #tpu.memory_space<vmem>>, vector<32x128xbf16>
    %cst = arith.constant dense<0.000000e+00> : vector<8x128xf32>
    %4 = tpu.matmul %2, %3, %cst {dimension_numbers = #tpu.dot_dimension_numbers<[1], [0], [0], [1], [0, 0, 1, 1], [], []>} : vector<8x32xbf16>, vector<32x128xbf16>, vector<8x128xf32> -> vector<8x128xf32>
    %cst_4 = arith.constant 2.500000e-01 : f32
    %5 = vector.broadcast %cst_4 : f32 to vector<8x128xf32>
    %6 = arith.mulf %4, %5 : vector<8x128xf32>
    %c0_5 = arith.constant 0 : index
    %c0_6 = arith.constant 0 : index
    %7 = vector.load %arg4[%c0_5, %c0_6] : memref<32x128xbf16, #tpu.memory_space<vmem>>, vector<32x128xbf16>
    %cst_7 = arith.constant dense<0.000000e+00> : vector<8x128xf32>
    %8 = tpu.matmul %2, %7, %cst_7 {dimension_numbers = #tpu.dot_dimension_numbers<[1], [0], [0], [1], [0, 0, 1, 1], [], []>} : vector<8x32xbf16>, vector<32x128xbf16>, vector<8x128xf32> -> vector<8x128xf32>
    %c0_8 = arith.constant 0 : index
    %c0_9 = arith.constant 0 : index
    %9 = vector.load %arg5[%c0_8, %c0_9] : memref<32x128xbf16, #tpu.memory_space<vmem>>, vector<32x128xbf16>
    %cst_10 = arith.constant dense<0.000000e+00> : vector<8x128xf32>
    %10 = tpu.matmul %2, %9, %cst_10 {dimension_numbers = #tpu.dot_dimension_numbers<[1], [0], [0], [1], [0, 0, 1, 1], [], []>} : vector<8x32xbf16>, vector<32x128xbf16>, vector<8x128xf32> -> vector<8x128xf32>
    %11 = vector.shape_cast %6 : vector<8x128xf32> to vector<1x8x128xf32>
    %12 = arith.truncf %11 : vector<1x8x128xf32> to vector<1x8x128xbf16>
    %c0_11 = arith.constant 0 : index
    %c0_12 = arith.constant 0 : index
    %c0_13 = arith.constant 0 : index
    %13 = vector.load %arg6[%c0_11, %c0_12, %c0_13] : memref<1x8x128xbf16, #tpu.memory_space<vmem>>, vector<1x8x128xbf16>
    tpu.vector_store %arg6[%c0_11, %c0_12, %c0_13], %12 {strides = array<i32>} : memref<1x8x128xbf16, #tpu.memory_space<vmem>>, vector<1x8x128xbf16>,
    %14 = vector.shape_cast %8 : vector<8x128xf32> to vector<1x8x128xf32>
    %15 = arith.truncf %14 : vector<1x8x128xf32> to vector<1x8x128xbf16>
    %c0_14 = arith.constant 0 : index
    %c0_15 = arith.constant 0 : index
    %c0_16 = arith.constant 0 : index
    %16 = vector.load %arg7[%c0_14, %c0_15, %c0_16] : memref<1x8x128xbf16, #tpu.memory_space<vmem>>, vector<1x8x128xbf16>
    tpu.vector_store %arg7[%c0_14, %c0_15, %c0_16], %15 {strides = array<i32>} : memref<1x8x128xbf16, #tpu.memory_space<vmem>>, vector<1x8x128xbf16>,
    %17 = vector.shape_cast %10 : vector<8x128xf32> to vector<1x8x128xf32>
    %18 = arith.truncf %17 : vector<1x8x128xf32> to vector<1x8x128xbf16>
    %c0_17 = arith.constant 0 : index
    %c0_18 = arith.constant 0 : index
    %c0_19 = arith.constant 0 : index
    %19 = vector.load %arg8[%c0_17, %c0_18, %c0_19] : memref<1x8x128xbf16, #tpu.memory_space<vmem>>, vector<1x8x128xbf16>
    tpu.vector_store %arg8[%c0_17, %c0_18, %c0_19], %18 {strides = array<i32>} : memref<1x8x128xbf16, #tpu.memory_space<vmem>>, vector<1x8x128xbf16>,
    return
  }
  func.func @transform_0(%arg0: i32, %arg1: i32) -> (i32, i32, i32) {
    %c0_i32 = arith.constant 0 : i32
    %c0_i32_0 = arith.constant 0 : i32
    return %arg0, %arg1, %c0_i32 : i32, i32, i32
  }
  func.func @transform_1(%arg0: i32, %arg1: i32) -> (i32, i32) {
    %c0_i32 = arith.constant 0 : i32
    %c0_i32_0 = arith.constant 0 : i32
    %c0_i32_1 = arith.constant 0 : i32
    return %c0_i32, %c0_i32_0 : i32, i32
  }
  func.func @transform_2(%arg0: i32, %arg1: i32) -> (i32, i32) {
    %c0_i32 = arith.constant 0 : i32
    %c0_i32_0 = arith.constant 0 : i32
    %c0_i32_1 = arith.constant 0 : i32
    return %c0_i32, %c0_i32_0 : i32, i32
  }
  func.func @transform_3(%arg0: i32, %arg1: i32) -> (i32, i32) {
    %c0_i32 = arith.constant 0 : i32
    %c0_i32_0 = arith.constant 0 : i32
    %c0_i32_1 = arith.constant 0 : i32
    return %c0_i32, %c0_i32_0 : i32, i32
  }
  func.func @transform_4(%arg0: i32, %arg1: i32) -> (i32, i32, i32) {
    %c0_i32 = arith.constant 0 : i32
    %c0_i32_0 = arith.constant 0 : i32
    return %arg0, %arg1, %c0_i32 : i32, i32, i32
  }
  func.func @transform_5(%arg0: i32, %arg1: i32) -> (i32, i32, i32) {
    %c0_i32 = arith.constant 0 : i32
    %c0_i32_0 = arith.constant 0 : i32
    return %arg0, %arg1, %c0_i32 : i32, i32, i32
  }
  func.func @transform_6(%arg0: i32, %arg1: i32) -> (i32, i32, i32) {
    %c0_i32 = arith.constant 0 : i32
    %c0_i32_0 = arith.constant 0 : i32
    return %arg0, %arg1, %c0_i32 : i32, i32, i32
  }
}

</mosaic_0001>

<bundles_post_ra>
// kernel: tpu_custom_call.1
= control target key start
LH: loop header
LB: loop body
LE: loop exit
PB: predicated region body
PF: predicated region fallthrough
CT: control target
= control target key end

     0   :  { %s1507_s0 = inlined_call_operand.hbm [shape: f32[2,8,32], index: 0, kind: input, shape index: {}]   ;;  %s1508_s1 = inlined_call_operand.hbm [shape: bf16[32,128], index: 1, kind: input, shape index: {}]   ;;  %s1509_s2 = inlined_call_operand.hbm [shape: bf16[32,128], index: 2, kind: input, shape index: {}]   ;;  %s1510_s3 = inlined_call_operand.hbm [shape: bf16[32,128], index: 3, kind: input, shape index: {}]   ;;  %s1511_s4 = inlined_call_operand.hbm [shape: bf16[2,8,128], index: 4, kind: output, shape index: {0}]   ;;  %s1512_s5 = inlined_call_operand.hbm [shape: bf16[2,8,128], index: 5, kind: output, shape index: {1}]   ;;  %s1513_s6 = inlined_call_operand.hbm [shape: bf16[2,8,128], index: 6, kind: output, shape index: {2}]  }
   0x1   :  { %1518 = sst [smem:[#allocation19_spill]] %s1507_s0 }
   0x2   :  { %1519 = sst [smem:[#allocation20_spill]] %s1508_s1 }
   0x3   :  { %1520 = sst [smem:[#allocation21_spill]] %s1509_s2 }
   0x4   :  { %12 = vsyncpa [#allocation3], 0 }
   0x5   :  { %14 = vsyncpa [#allocation3 + $0x1], 0 }
   0x6   :  { %15 = vsyncpa [#allocation6], 0 }
   0x7   :  { %16 = vsyncpa [#allocation9], 0 }
   0x8   :  { %17 = vsyncpa [#allocation4], 0 }
   0x9   :  { %19 = vsyncpa [#allocation4 + $0x1], 0 }
   0xa   :  { %20 = vsyncpa [#allocation12], 0 }
   0xb   :  { %22 = vsyncpa [#allocation12 + $0x1], 0  ;;  %s1235_s21 = smov 0   ;;  %s1237_s22 = smov 0  }
   0xc   :  { %s1239_s23 = smov 0   ;;  %s1241_s24 = smov 0  }
   0xd   :  { %s1243_s25 = smov 0   ;;  %s1245_s26 = smov 0  }
   0xe LB: > { %s1266_s27 = sadd.s32 4294967295, %s1187_s26   ;;  %s1516_s28 = sadd.s32 4294967294, %s1187_s26   ;;  %s1187_s26 = sphi %s1245_s26, %s28_s26   ;;  %s1183_s25 = sphi %s1243_s25, %s1544_s25   ;;  %s1179_s24 = sphi %s1241_s24, %s1543_s24   ;;  %s1175_s23 = sphi %s1239_s23, %s1542_s23   ;;  %s1171_s22 = sphi %s1237_s22, %s1541_s22   ;;  %s1167_s21 = sphi %s1235_s21, %s1540_s21  }
   0xf   : > { %p62_p0 = scmp.ne.s32.totalorder %s1171_s22, %s1167_s21  ;;  %p1514_p1 = scmp.eq.s32.totalorder %s1266_s27, 0 }
  0x10   : > { %p157_p3 = scmp.eq.s32.totalorder %s1516_s28, 1  ;;  %p759_p5 = scmp.ge.s32.totalorder %s1187_s26, 1 }
  0x11   : > { %p1277_p4 = por %p1514_p1, %p62_p0  ;;  %p220_p7 = scmp.lt.s32.totalorder %s1187_s26, 3 }
  0x12   : > { %p1282_p6 = por %p157_p3, %p62_p0  ;;  %s1189_s8 = smov [#allocation5]  }
  0x13   : > { %s1521_s29 = scalar_select %p1277_p4, 1, 0 }
  0x14   : > { %s1522_s30 = scalar_select %p1282_p6, 1, 0 }
  0x15   : > { %p1287_p8 = pnand %p759_p5, %p220_p7  ;;  %s232_s9 = sshll.u32 %s1189_s8, 4  ;;  %s233_s9 = int_to_ptr.vmem [resolvable:$true] %s232_s9 }
  0x16   : > { %s1190_s11 = smov [#allocation7]   ;;  %s1191_s13 = smov [#allocation8]  }
  0x17   : > { %p844_p9 = pneg %p1287_p8  ;;  %s245_s12 = sshll.u32 %s1190_s11, 4  ;;  %s246_s12 = int_to_ptr.vmem [resolvable:$true] %s245_s12 }
  0x18   : > { %s258_s14 = sshll.u32 %s1191_s13, 4  ;;  %s948_s15 = scalar_lea.vmem %s233_s9, 256  ;;  %s259_s14 = int_to_ptr.vmem [resolvable:$true] %s258_s14 }
  0x19   : > { %p1296_p11 = pnand %p844_p9, %p1514_p1  ;;  %p949_p13 = scmp.ne.s32.totalorder %s233_s9, %s948_s15 }
  0x1a   : > { %p956_p5 = scmp.lt.s32.totalorder %s233_s9, %s233_s9  ;;  %p957_p7 = scmp.lt.s32.totalorder %s948_s15, %s948_s15 }
  0x1b   : > { %p939_p12 = pneg %p1296_p11 }
  0x1c   : > { %p958_p9 = por %p957_p7, %p956_p5 }
  0x1d   : > { %p951_p0 = pnand %p949_p13, %p939_p12 }
  0x1f   : > { %p952_p3 = pneg %p951_p0 }
  0x21   : > { %p959_p10 = pnand %p958_p9, %p952_p3 }
  0x23   : > { %962 = shalt.err (!%p959_p10)
}
  0x24   : > { %s1192_s16 = smov 64   ;;  %s1193_s17 = smov 4  }
  0x25   : > { %s1525_s1 = sld [smem:[#allocation20_spill]]  ;;  %s974_s20 = scalar_lea.vmem %s246_s12, 256 }
  0x26   : > { %p975_p1 = scmp.ne.s32.totalorder %s246_s12, %s974_s20  ;;  %p982_p2 = scmp.lt.s32.totalorder %s246_s12, %s246_s12 }
  0x27   : > { %p983_p6 = scmp.lt.s32.totalorder %s974_s20, %s974_s20 }
  0x28   : > { %p977_p13 = pnand %p975_p1, %p939_p12 }
  0x29   : > { %p984_p5 = por %p983_p6, %p982_p2 }
  0x2a   : > { %p978_p0 = pneg %p977_p13 }
  0x2b   : > { %847 = dma.hbm_to_vmem [thread:$0]  (!%p1296_p11), %s1525_s1, 256, %s233_s9, [#allocation6], %s1192_s16, %s1192_s16, %s1193_s17  }
  0x2c   : > { %p985_p3 = pnand %p984_p5, %p978_p0 }
  0x2e   : > { %988 = shalt.err (!%p985_p3)
}
  0x2f   : > { %s1526_s2 = sld [smem:[#allocation21_spill]]  ;;  %s1000_s9 = scalar_lea.vmem %s259_s14, 256 }
  0x30   : > { %p1001_p10 = scmp.ne.s32.totalorder %s259_s14, %s1000_s9  ;;  %p1008_p9 = scmp.lt.s32.totalorder %s259_s14, %s259_s14 }
  0x31   : > { %p1009_p13 = scmp.lt.s32.totalorder %s1000_s9, %s1000_s9 }
  0x32   : > { %p1003_p7 = pnand %p1001_p10, %p939_p12 }
  0x33   : > { %p1010_p4 = por %p1009_p13, %p1008_p9 }
  0x34   : > { %p1004_p1 = pneg %p1003_p7 }
  0x35   : > { %850 = dma.hbm_to_vmem [thread:$0]  (!%p1296_p11), %s1526_s2, 256, %s246_s12, [#allocation6], %s1192_s16, %s1192_s16, %s1193_s17  }
  0x36   : > { %p1011_p2 = pnand %p1010_p4, %p1004_p1 }
  0x38   : > { %1014 = shalt.err (!%p1011_p2)
}
  0x39   : > { %853 = dma.hbm_to_vmem [thread:$0]  (!%p1296_p11), %s1510_s3, 256, %s259_s14, [#allocation9], %s1192_s16, %s1192_s16, %s1193_s17  }
  0x3a   : > { %s49_s12 = sadd.s32 1, %s1175_s23  ;;  %s40_s18 = sadd.s32 1, %s1183_s25 }
  0x3b   : > { %p56_p4 = scmp.ne.s32.totalorder %s1175_s23, %s1171_s22  ;;  %p42_p6 = scmp.ge.s32.totalorder %s40_s18, 2 }
  0x3c   : > { %p57_p12 = scmp.eq.s32.totalorder %s1187_s26, 0  ;;  %p1527_p0 = scmp.eq.s32.totalorder %s1266_s27, 1 }
  0x3d   : > { %p871_p3 = scmp.lt.s32.totalorder %s1187_s26, 2  ;;  %s1546_s18 = smov (%p42_p6, %s40_s18), 0 }
  0x3e   : > { %p1333_p5 = por %p1527_p0, %p56_p4  ;;  %p58_p10 = por %p57_p12, %p56_p4 }
  0x3f   : > { %s272_s19 = sand.u32 1, %s1175_s23   ;;  %s44_s20 = ssub.s32 %s1183_s25, %s1546_s18 }
  0x40   : > { %p47_p7 = scmp.eq.s32.totalorder %s44_s20, 0  ;;  %s764_s14 = sshll.u32 %s272_s19, 3 }
  0x41   : > { %s765_s16 = sshll.u32 %s1183_s25, 7  ;;  %s1529_s0 = sld [smem:[#allocation19_spill]] }
  0x42   : > { %s1345_s17 = scalar_select %p47_p7, %s1175_s23, %s49_s12  }
  0x43   : > { %s276_s13 = scalar_lea.vmem [#allocation2], %s764_s14  ;;  %p1352_p11 = pnand %p871_p3, %p58_p10 }
  0x44   : > { %s284_s15 = sshll.u32 %s276_s13, 4  ;;  %s273_s1 = scalar_lea.sflag [#allocation3], %s272_s19  ;;  %s285_s15 = int_to_ptr.vmem [resolvable:$true] %s284_s15 }
  0x45   : > { %p1017_p1 = pneg %p1352_p11  ;;  %s1028_s20 = scalar_lea.vmem %s285_s15, 128 }
  0x46   : > { %p1029_p9 = scmp.ne.s32.totalorder %s285_s15, %s1028_s20  ;;  %s1194_s12 = smov [#allocation2]  }
  0x47   : > { %s282_s9 = scalar_lea.hbm %s1529_s0, %s765_s16  ;;  %s1033_s2 = sshll.u32 %s1194_s12, 4  ;;  %s1034_s2 = int_to_ptr.vmem [resolvable:$false] %s1033_s2 }
  0x48   : > { %p1031_p13 = pnand %p1029_p9, %p1017_p1  ;;  %s1035_s16 = scalar_lea.vmem %s1034_s2, 256 }
  0x49   : > { %p1036_p4 = scmp.lt.s32.totalorder %s285_s15, %s1034_s2  ;;  %p1037_p6 = scmp.lt.s32.totalorder %s1035_s16, %s1028_s20 }
  0x4a   : > { %p1032_p2 = pneg %p1031_p13 }
  0x4b   : > { %p1038_p12 = por %p1037_p6, %p1036_p4 }
  0x4d   : > { %p1039_p0 = pnand %p1038_p12, %p1032_p2 }
  0x4f   : > { %1042 = shalt.err (!%p1039_p0)
}
  0x50   : > { %857 = dma.hbm_to_vmem [thread:$0]  (!%p1352_p11), %s282_s9, 128, %s285_s15, %s273_s1  }
  0x51   : > { %293 = sbr.rel (%p1287_p8) target bundleno = 358 (0x166), region = 36  ;;  %s1363_s19 = sand.u32 (!%p1287_p8), 1, %s1171_s22  }
  0x52   : > { %s767_s14 = sshll.u32 (!%p1287_p8), %s1363_s19, 3  ;;  %s296_s8 = scalar_lea.sflag (!%p1287_p8), [#allocation3], %s1363_s19 }
  0x53   : > { %s299_s11 = scalar_lea.vmem (!%p1287_p8), [#allocation2], %s767_s14  ;;  %p1531_p3 = scmp.ne.s32.totalorder (!%p1287_p8), %s1521_s29, 0 }
  0x56   : > { %1146 = dma.done.wait (%p1531_p3), %s296_s8, 128  }
  0x57   : > { %1148 = vsyncadd (%p1531_p3), %s296_s8, 4294967168  ;;  %p1532_p10 = scmp.eq.s32.totalorder %s1266_s27, 0 }
  0x59   : > { %1150 = dma.done.wait (%p1532_p10), [#allocation6], 512   ;;  %p1533_p7 = pmov %p1532_p10 }
  0x5b   : > { %1152 = vsyncadd (%p1533_p7), [#allocation6], 4294966784  ;;  %p1534_p8 = pmov %p1533_p7 }
  0x5c   : > { %p1535_p11 = pmov %p1533_p7 }
  0x5d   : > { %1154 = dma.done.wait (%p1534_p8), [#allocation9], 256  }
  0x5e   : > { %1156 = vsyncadd (%p1535_p11), [#allocation9], 4294967040  ;;  %v1195_v0 = vmov 0.0   ;;  %vm1196_vm0 = vmmov 0   ;;  %v931_v1 = vld [vmem:[#allocation5 + $0x8] sm:$0xff]   ;;  %v932_v2 = vld [vmem:[#allocation7 + $0x8] sm:$0xff]  }
  0x5f   : > { %800 = vmatprep.subr.bf16.mxu0 %v1195_v0  ;;  %808 = vmatprep.subr.bf16.mxu1 %v1195_v0  ;;  %v933_v3 = vld [vmem:[#allocation5] sm:$0xff]   ;;  %v351_v4 = vld [vmem:[%s299_s11] sm:$0xff]  ;;  %vm369_vm1 = vcmask 261120   ;;  %v935_v7 = vld [vmem:[#allocation8 + $0x8] sm:$0xff]   ;;  %s1383_s1 = sshll.u32 %s1363_s19, 2  ;;  %s537_s2 = sand.u32 1, %s1266_s27  }
  0x60   : > { %804 = vmatprep.mubr.msk.bf16.mxu0 %vm1196_vm0, %v1195_v0  ;;  %812 = vmatprep.mubr.msk.bf16.mxu1 %vm1196_vm0, %v1195_v0  ;;  %v934_v5 = vld [vmem:[#allocation7] sm:$0xff]   ;;  %v352_v6 = vpack.c.bf16 %v351_v4, %v351_v4  ;;  %v936_v8 = vld [vmem:[#allocation8] sm:$0xff]   ;;  %s1387_s28 = sshll.u32 %s1179_s24, 6  ;;  %s342_s29 = scalar_lea.vmem [#allocation11], %s1383_s1 }
  0x61   : > { %801 = vmatpush3.bf16.msra.mxu0 %v931_v1  ;;  %809 = vmatpush3.bf16.msra.mxu1 %v932_v2  ;;  %s571_s7 = sshll.u32 %s342_s29, 4  ;;  %s335_s9 = scalar_lea.vmem [#allocation10], %s1383_s1  ;;  %s1397_s7 = int_to_ptr.vmem [resolvable:$true] %s571_s7 }
  0x62   : > { %802 = vmatprep.subr.bf16.mxu0 %v1195_v0  ;;  %810 = vmatprep.subr.bf16.mxu1 %v1195_v0  ;;  %s557_s13 = sshll.u32 %s335_s9, 4  ;;  %s1395_s12 = scalar_lea.hbm %s1512_s5, %s1387_s28  ;;  %s1405_s13 = int_to_ptr.vmem [resolvable:$true] %s557_s13 }
  0x63   : > { %s1403_s16 = scalar_lea.hbm %s1511_s4, %s1387_s28  ;;  %s1517_s14 = scalar_lea.vmem [#allocation13], %s1383_s1 }
  0x64   : > { %s1410_s8 = sshll.u32 %s1517_s14, 4  ;;  %s1412_s11 = scalar_lea.sflag [#allocation12], %s537_s2  ;;  %s586_s8 = int_to_ptr.vmem [resolvable:$true] %s1410_s8 }
  0x65   : > { %803 = vmatpush3.bf16.msra.mxu0 %v933_v3  ;;  %811 = vmatpush3.bf16.msra.mxu1 %v934_v5  ;;  %s1043_s15 = scalar_lea.vmem %s1397_s7, 64  ;;  %s1197_s20 = smov [#allocation11]  }
  0x66   : > { %816 = vmatprep.subr.bf16.mxu0 %v1195_v0  ;;  %p1044_p1 = scmp.ne.s32.totalorder %s1397_s7, %s1043_s15  ;;  %s1047_s24 = sshll.u32 %s1197_s20, 4  ;;  %s1048_s24 = int_to_ptr.vmem [resolvable:$false] %s1047_s24 }
  0x67   : > { %s1049_s27 = scalar_lea.vmem %s1048_s24, 128  ;;  %p1050_p2 = scmp.lt.s32.totalorder %s1397_s7, %s1048_s24 }
  0x68   : > { %805 = vmatmul.mubr.msk.bf16.vlgmr.msra.gmra.mxu0 %vm369_vm1, %v352_v6  ;;  %813 = vmatmul.mubr.msk.bf16.vlgmr.msra.gmra.mxu1 %vm369_vm1, %v352_v6  ;;  %p1045_p9 = pnand %p1044_p1, %p1333_p5  ;;  %p1051_p4 = scmp.lt.s32.totalorder %s1049_s27, %s1043_s15 }
  0x69   : > { %817 = vmatpush3.bf16.msra.mxu0 %v935_v7  ;;  %820 = vmatprep.mubr.msk.bf16.mxu0 %vm1196_vm0, %v1195_v0 }
  0x6a   : > { %818 = vmatprep.subr.bf16.mxu0 %v1195_v0  ;;  %p1046_p13 = pneg %p1045_p9  ;;  %p1052_p6 = por %p1051_p4, %p1050_p2 }
  0x6c   : > { %p1053_p12 = pnand %p1052_p6, %p1046_p13 }
  0x6d   : > { %819 = vmatpush3.bf16.msra.mxu0 %v936_v8 }
  0x70   : > { %821 = vmatmul.mubr.msk.bf16.vlgmr.msra.gmra.mxu0 %vm369_vm1, %v352_v6 }
 0x128   : > { %v407_v9 = vpop.f32.mrf.mxu0  ;;  %v464_v11 = vpop.f32.mrf.mxu1 }
 0x129   : > { %v413_v10 = vmul.f32 0.25, %v407_v9  ;;  %v528_v13 = vpack.c.bf16 %v464_v11, %v464_v11 }
 0x12a   : > { %v806_v12 = vpop.f32.mrf.mxu0  ;;  %v814_v15 = vpop.f32.mrf.mxu1 }
 0x12b   : > { %v526_v14 = vpack.c.bf16 %v413_v10, %v413_v10  ;;  %529 = vst [vmem:[%s342_s29] sm:$0xf] %v528_v13 }
 0x12c   : > { %v410_v16 = vpop.f32.mrf.mxu0  ;;  %v467_v17 = vpop.f32.mrf.mxu1 }
 0x12d   : > { %527 = vst [vmem:[%s335_s9] sm:$0xf] %v526_v14 }
 0x12e   : > { %1056 = shalt.err (!%p1053_p12)
}
 0x12f   : > { %s1057_s2 = scalar_lea.hbm %s1395_s12, 64  ;;  %s1061_s20 = scalar_lea.hbm %s1512_s5, 128 }
 0x130   : > { %p1058_p0 = scmp.ne.s32.totalorder %s1395_s12, %s1057_s2  ;;  %p1062_p7 = scmp.lt.s32.totalorder %s1395_s12, %s1512_s5 }
 0x131   : > { %p1063_p8 = scmp.lt.s32.totalorder %s1061_s20, %s1057_s2 }
 0x132   : > { %p1059_p3 = pnand %p1058_p0, %p1333_p5 }
 0x133   : > { %p1064_p11 = por %p1063_p8, %p1062_p7 }
 0x134   : > { %p1060_p10 = pneg %p1059_p3 }
 0x136   : > { %p1065_p1 = pnand %p1064_p11, %p1060_p10 }
 0x138   : > { %1068 = shalt.err (!%p1065_p1)
}
 0x139   : > { %839 = dma.vmem_to_hbm [thread:$0]  (%p1333_p5), %s1397_s7, 64, %s1395_s12, %s1412_s11   ;;  %v807_v18 = vpop.f32.mrf.mxu0 }
 0x13a   : > { %s533_s15 = scalar_lea.sflag [#allocation4], %s1363_s19  ;;  %s1069_s24 = scalar_lea.vmem %s1405_s13, 64 }
 0x13b   : > { %p1070_p9 = scmp.ne.s32.totalorder %s1405_s13, %s1069_s24  ;;  %s1198_s0 = smov [#allocation10]  }
 0x13c   : > { %s1073_s14 = sshll.u32 %s1198_s0, 4  ;;  %s1074_s14 = int_to_ptr.vmem [resolvable:$false] %s1073_s14 }
 0x13d   : > { %p1071_p13 = pnand %p1070_p9, %p1333_p5  ;;  %s1075_s27 = scalar_lea.vmem %s1074_s14, 128 }
 0x13e   : > { %p1076_p4 = scmp.lt.s32.totalorder %s1405_s13, %s1074_s14  ;;  %p1077_p6 = scmp.lt.s32.totalorder %s1075_s27, %s1069_s24 }
 0x13f   : > { %p1072_p2 = pneg %p1071_p13 }
 0x140   : > { %p1078_p12 = por %p1077_p6, %p1076_p4 }
 0x142   : > { %p1079_p0 = pnand %p1078_p12, %p1072_p2 }
 0x144   : > { %1082 = shalt.err (!%p1079_p0)
}
 0x145   : > { %s1083_s7 = scalar_lea.hbm %s1403_s16, 64  ;;  %s1087_s2 = scalar_lea.hbm %s1511_s4, 128 }
 0x146   : > { %p1084_p3 = scmp.ne.s32.totalorder %s1403_s16, %s1083_s7  ;;  %p1088_p8 = scmp.lt.s32.totalorder %s1403_s16, %s1511_s4 }
 0x147   : > { %p1089_p11 = scmp.lt.s32.totalorder %s1087_s2, %s1083_s7 }
 0x148   : > { %p1085_p10 = pnand %p1084_p3, %p1333_p5 }
 0x149   : > { %p1090_p1 = por %p1089_p11, %p1088_p8 }
 0x14a   : > { %p1086_p7 = pneg %p1085_p10 }
 0x14c   : > { %p1091_p9 = pnand %p1090_p1, %p1086_p7 }
 0x14e   : > { %1094 = shalt.err (!%p1091_p9)
}
 0x14f   : > { %838 = dma.vmem_to_hbm [thread:$0]  (%p1333_p5), %s1405_s13, 64, %s1403_s16, %s533_s15   ;;  %v815_v19 = vpop.f32.mrf.mxu1  ;;  %v520_v20 = vpop.f32.mrf.mxu0 }
 0x150   : > { %v530_v21 = vpack.c.bf16 %v520_v20, %v520_v20  ;;  %s1460_s0 = scalar_lea.hbm %s1513_s6, %s1387_s28  ;;  %s1536_s14 = scalar_lea.vmem [#allocation13], %s1383_s1 }
 0x151   : > { %v822_v22 = vpop.f32.mrf.mxu0  ;;  %s1095_s27 = scalar_lea.vmem %s586_s8, 64  ;;  %s1199_s7 = smov [#allocation13]  }
 0x152   : > { %531 = vst [vmem:[%s1536_s14] sm:$0xf] %v530_v21  ;;  %p1096_p13 = scmp.ne.s32.totalorder %s586_s8, %s1095_s27  ;;  %s1099_s13 = sshll.u32 %s1199_s7, 4  ;;  %s1100_s13 = int_to_ptr.vmem [resolvable:$false] %s1099_s13 }
 0x153   : > { %v523_v23 = vpop.f32.mrf.mxu0  ;;  %s1101_s16 = scalar_lea.vmem %s1100_s13, 128  ;;  %p1102_p6 = scmp.lt.s32.totalorder %s586_s8, %s1100_s13 }
 0x154   : > { %p1097_p2 = pnand %p1096_p13, %p1333_p5  ;;  %p1103_p12 = scmp.lt.s32.totalorder %s1101_s16, %s1095_s27 }
 0x156   : > { %p1098_p4 = pneg %p1097_p2  ;;  %p1104_p0 = por %p1103_p12, %p1102_p6 }
 0x158   : > { %p1105_p3 = pnand %p1104_p0, %p1098_p4 }
 0x15a   : > { %1108 = shalt.err (!%p1105_p3)
}
 0x15b   : > { %s1109_s1 = scalar_lea.hbm %s1460_s0, 64  ;;  %s1113_s19 = scalar_lea.hbm %s1513_s6, 128 }
 0x15c   : > { %p1110_p10 = scmp.ne.s32.totalorder %s1460_s0, %s1109_s1  ;;  %p1114_p11 = scmp.lt.s32.totalorder %s1460_s0, %s1513_s6 }
 0x15d   : > { %p1115_p1 = scmp.lt.s32.totalorder %s1113_s19, %s1109_s1 }
 0x15e   : > { %p1111_p7 = pnand %p1110_p10, %p1333_p5 }
 0x15f   : > { %p1116_p9 = por %p1115_p1, %p1114_p11 }
 0x160   : > { %p1112_p8 = pneg %p1111_p7 }
 0x162   : > { %p1117_p13 = pnand %p1116_p9, %p1112_p8 }
 0x164   : > { %1120 = shalt.err (!%p1117_p13)
}
 0x165   : > { %840 = dma.vmem_to_hbm [thread:$0]  (%p1333_p5), %s586_s8, 64, %s1460_s0, %s1412_s11   ;;  %v823_v24 = vpop.f32.mrf.mxu0 }
 0x166 PF: > { %s597_s29 = sand.u32 1, %s1167_s21   ;;  %p1537_p2 = scmp.ne.s32.totalorder %s1522_s30, 0 }
 0x167   : > { %p1538_p4 = scmp.ge.s32.totalorder %s1187_s26, 2  ;;  %s598_s9 = scalar_lea.sflag [#allocation4], %s597_s29 }
 0x169   : > { %p859_p6 = pnand %p1538_p4, %p1537_p2 }
 0x16b   : > { %p860_p12 = pneg %p859_p6 }
 0x16d   : > { %1158 = dma.done.wait (%p860_p12), %s598_s9, 64  }
 0x16e   : > { %1160 = vsyncadd (%p860_p12), %s598_s9, 4294967232  ;;  %s1539_s20 = sadd.s32 4294967294, %s1187_s26  }
 0x16f   : > { %s606_s24 = sand.u32 1, %s1539_s20  }
 0x170   : > { %s607_s10 = scalar_lea.sflag [#allocation12], %s606_s24 }
 0x171   : > { %1162 = dma.done.wait (%p860_p12), %s607_s10, 128  }
 0x172   : > { %1164 = vsyncadd (%p860_p12), %s607_s10, 4294967168  ;;  %s28_s26 = sadd.s32 1, %s1187_s26   ;;  %s1540_s21 = smov %s1171_s22 }
 0x173   : > { %p25_p5 = scmp.ge.s32.totalorder %s28_s26, 4   ;;  %s1541_s22 = smov %s1175_s23 }
 0x174   : > { %s1542_s23 = smov %s1345_s17  ;;  %s1543_s24 = smov %s1183_s25 }
 0x175   : > { %s1544_s25 = smov %s1546_s18  ;;  %27 = sbr.rel (!%p25_p5) target bundleno = 14 (0xe), region = 125 }
 0x17a   :  { %621 = vsyncpa [#allocation3], 1 }
 0x17b   :  { %623 = vsyncpa [#allocation3 + $0x1], 1 }
 0x17c   :  { %624 = vsyncpa [#allocation6], 1 }
 0x17d   :  { %625 = vsyncpa [#allocation9], 1 }
 0x17e   :  { %626 = vsyncpa [#allocation4], 1 }
 0x17f   :  { %628 = vsyncpa [#allocation4 + $0x1], 1 }
 0x180   :  { %629 = vsyncpa [#allocation12], 1 }
 0x181   :  { %631 = vsyncpa [#allocation12 + $0x1], 1 }

</bundles_post_ra>
